<compile_context>
chip_gen: v6e
topology: v6e:2x2x1
jax: 0.10.0
libtpu: 0.0.40
codegen_flags: <defaults>
</compile_context>

<pallas_src>
import functools

import jax
import jax.numpy as jnp
from jax.experimental import pallas as pl
from jax.experimental.pallas import tpu as pltpu


def _gmuc_loss_kernel(ae_ref, qs_ref, qv_ref, qc_ref, fs_ref, out_ref, *,
                      num_neg, margin, mae_weight, rank_weight_over_b,
                      ae_weight, if_conf):
    # ae_ref : (1,)           f32 SMEM   -- query_ae_loss scalar
    # qs_ref : (B, 1)         f32 VMEM   -- query_scores
    # qv_ref : (B, 1)         f32 VMEM   -- query_scores_var
    # qc_ref : (B, 1)         f32 VMEM   -- query_confidence
    # fs_ref : (B, num_neg)   f32 VMEM   -- false_scores, row j = negatives of query j
    # out_ref: (1, 1)         f32 SMEM   -- scalar loss
    qs = qs_ref[...]                                                  # (B, 1)
    qv = qv_ref[...]                                                  # (B, 1)
    qc = qc_ref[...]                                                  # (B, 1)
    fs = fs_ref[...]                                                  # (B, num_neg)

    # Per-query mean of negative scores: lane-direction reduce (XLU slot,
    # idle in this kernel).  When num_neg == 1 this is the identity, matching
    # the PyTorch branch that skips the mean entirely.
    fs_mean = jnp.sum(fs, axis=1, keepdims=True) * (1.0 / num_neg)    # (B, 1)

    # Margin-ranking term (relu), optionally gated by the confidence mask.
    rank = jnp.maximum(margin - (qs - fs_mean), 0.0)                  # (B, 1)
    if if_conf:
        conf_mask = jnp.where(qc < 0.5, jnp.zeros_like(qc), qc)
        rank = rank * conf_mask

    # Fuse the MAE sum and the rank mean into a single reduction;
    # mae_weight and rank_weight/B are compile-time constants folded in here.
    per = mae_weight * (qv - qc) ** 2 + rank_weight_over_b * rank     # (B, 1)
    total = jnp.sum(per) + ae_weight * ae_ref[0]

    out_ref[0, 0] = total


@functools.partial(
    jax.jit,
    static_argnames=("num_neg", "margin", "mae_weight", "rank_weight",
                     "ae_weight", "if_conf"))
def gmuc_loss(query_scores, query_scores_var, query_ae_loss, false_scores,
              query_confidence, *, num_neg, margin, mae_weight, rank_weight,
              ae_weight, if_conf):
    """JAX/Pallas equivalent of GMUC_Loss.forward."""
    B = query_scores.shape[0]

    # Row-major-preserving reshapes only (bitcasts) -- no concat / transpose.
    qs = query_scores.reshape(B, 1).astype(jnp.float32)
    qv = query_scores_var.reshape(B, 1).astype(jnp.float32)
    qc = query_confidence.reshape(B, 1).astype(jnp.float32)
    # reshape(B, num_neg): row j holds the num_neg negatives of query j,
    # exactly matching the PyTorch reshape + mean(dim=1).
    fs = false_scores.reshape(B, num_neg).astype(jnp.float32)
    ae = jnp.asarray(query_ae_loss, jnp.float32).reshape(1)           # SMEM scalar

    kernel = functools.partial(
        _gmuc_loss_kernel,
        num_neg=int(num_neg),
        margin=float(margin),
        mae_weight=float(mae_weight),
        # torch.mean divides by numel (B) regardless of the conf mask.
        rank_weight_over_b=float(rank_weight) / float(B),
        ae_weight=float(ae_weight),
        if_conf=bool(if_conf),
    )

    out = pl.pallas_call(
        kernel,
        out_shape=jax.ShapeDtypeStruct((1, 1), jnp.float32),
        in_specs=[
            pl.BlockSpec(memory_space=pltpu.MemorySpace.SMEM),   # ae scalar
            pl.BlockSpec(memory_space=pltpu.MemorySpace.VMEM),   # qs (B,1)
            pl.BlockSpec(memory_space=pltpu.MemorySpace.VMEM),   # qv (B,1)
            pl.BlockSpec(memory_space=pltpu.MemorySpace.VMEM),   # qc (B,1)
            pl.BlockSpec(memory_space=pltpu.MemorySpace.VMEM),   # fs (B,num_neg)
        ],
        out_specs=pl.BlockSpec(memory_space=pltpu.MemorySpace.SMEM),
    )(ae, qs, qv, qc, fs)
    return out[0, 0]


def _reference(query_scores, query_scores_var, query_ae_loss, false_scores,
               query_confidence, *, num_neg, margin, mae_weight, rank_weight,
               ae_weight, if_conf):
    """Pure-JAX reference mirroring the PyTorch forward."""
    B = query_scores.shape[0]
    fs = false_scores
    if num_neg != 1:
        fs = jnp.mean(fs.reshape(B, num_neg), axis=1).reshape(B)
    conf_mask = jnp.where(query_confidence < 0.5,
                          jnp.zeros_like(query_confidence), query_confidence)
    mae_loss = mae_weight * jnp.sum((query_scores_var - query_confidence) ** 2)
    rank = jax.nn.relu(margin - (query_scores - fs))
    if if_conf:
        rank_loss = jnp.mean(rank * conf_mask)
    else:
        rank_loss = jnp.mean(rank)
    rank_loss = rank_weight * rank_loss
    return rank_loss + mae_loss + ae_weight * query_ae_loss


if __name__ == "__main__":
    def run_case(num_neg, if_conf, B):
        args = dict(num_neg=num_neg, margin=5.0, mae_weight=0.1,
                    rank_weight=1.0, ae_weight=0.01, if_conf=if_conf)
        key = jax.random.PRNGKey(0)
        k1, k2, k3, k4, k5 = jax.random.split(key, 5)

        query_scores = jax.random.normal(k1, (B,), jnp.float32)
        query_scores_var = jax.random.uniform(k2, (B,), jnp.float32)
        query_confidence = jax.random.uniform(k3, (B,), jnp.float32)
        false_scores = jax.random.normal(k4, (B * num_neg,), jnp.float32)
        query_ae_loss = jax.random.uniform(k5, (), jnp.float32)

        loss = gmuc_loss(query_scores, query_scores_var, query_ae_loss,
                         false_scores, query_confidence, **args)
        loss = jax.block_until_ready(loss)

        ref = _reference(query_scores, query_scores_var, query_ae_loss,
                         false_scores, query_confidence, **args)
        assert jnp.allclose(loss, ref, rtol=1e-5, atol=1e-5), \
            (num_neg, if_conf, loss, ref)

    # Matches the PyTorch module's two code paths (num_neg != 1 / == 1,
    # if_conf on / off).
    run_case(num_neg=4, if_conf=True, B=8)
    run_case(num_neg=1, if_conf=False, B=8)

    print("KERNEL_OK")
</pallas_src>

<mosaic_0001>
module attributes {stable_mosaic.version = 11 : i64} {
  func.func @_gmuc_loss_kernel(%arg0: memref<1xf32, #tpu.memory_space<smem>>, %arg1: memref<8x1xf32, #tpu.memory_space<vmem>>, %arg2: memref<8x1xf32, #tpu.memory_space<vmem>>, %arg3: memref<8x1xf32, #tpu.memory_space<vmem>>, %arg4: memref<8x4xf32, #tpu.memory_space<vmem>>, %arg5: memref<1x1xf32, #tpu.memory_space<smem>>) attributes {dimension_semantics = [], scalar_prefetch = 0 : i64, scratch_operands = 0 : i64, tpu.core_type = #tpu.core_type<tc>} {
    %c0 = arith.constant 0 : index
    %c0_0 = arith.constant 0 : index
    %0 = vector.load %arg1[%c0, %c0_0] : memref<8x1xf32, #tpu.memory_space<vmem>>, vector<8x1xf32>
    %c0_1 = arith.constant 0 : index
    %c0_2 = arith.constant 0 : index
    %1 = vector.load %arg2[%c0_1, %c0_2] : memref<8x1xf32, #tpu.memory_space<vmem>>, vector<8x1xf32>
    %c0_3 = arith.constant 0 : index
    %c0_4 = arith.constant 0 : index
    %2 = vector.load %arg3[%c0_3, %c0_4] : memref<8x1xf32, #tpu.memory_space<vmem>>, vector<8x1xf32>
    %c0_5 = arith.constant 0 : index
    %c0_6 = arith.constant 0 : index
    %3 = vector.load %arg4[%c0_5, %c0_6] : memref<8x4xf32, #tpu.memory_space<vmem>>, vector<8x4xf32>
    %cst = arith.constant dense<0.000000e+00> : vector<8xf32>
    %4 = vector.multi_reduction <add>, %3, %cst [1] : vector<8x4xf32> to vector<8xf32>
    %5 = vector.shape_cast %4 : vector<8xf32> to vector<8x1xf32>
    %cst_7 = arith.constant 2.500000e-01 : f32
    %6 = vector.broadcast %cst_7 : f32 to vector<8x1xf32>
    %7 = arith.mulf %5, %6 : vector<8x1xf32>
    %8 = arith.subf %0, %7 : vector<8x1xf32>
    %cst_8 = arith.constant 5.000000e+00 : f32
    %9 = vector.broadcast %cst_8 : f32 to vector<8x1xf32>
    %10 = arith.subf %9, %8 : vector<8x1xf32>
    %cst_9 = arith.constant 0.000000e+00 : f32
    %11 = vector.broadcast %cst_9 : f32 to vector<8x1xf32>
    %12 = arith.maximumf %10, %11 : vector<8x1xf32>
    %cst_10 = arith.constant 5.000000e-01 : f32
    %13 = vector.broadcast %cst_10 : f32 to vector<8x1xf32>
    %14 = arith.cmpf olt, %2, %13 : vector<8x1xf32>
    %cst_11 = arith.constant 0.000000e+00 : f32
    %15 = vector.broadcast %cst_11 : f32 to vector<8x1xf32>
    %16 = arith.select %14, %15, %2 : vector<8x1xi1>, vector<8x1xf32>
    %17 = arith.mulf %12, %16 : vector<8x1xf32>
    %18 = arith.subf %1, %2 : vector<8x1xf32>
    %19 = arith.mulf %18, %18 : vector<8x1xf32>
    %cst_12 = arith.constant 1.000000e-01 : f32
    %20 = vector.broadcast %cst_12 : f32 to vector<8x1xf32>
    %21 = arith.mulf %20, %19 : vector<8x1xf32>
    %cst_13 = arith.constant 1.250000e-01 : f32
    %22 = vector.broadcast %cst_13 : f32 to vector<8x1xf32>
    %23 = arith.mulf %22, %17 : vector<8x1xf32>
    %24 = arith.addf %21, %23 : vector<8x1xf32>
    %25 = vector.shape_cast %24 : vector<8x1xf32> to vector<1x8x1xf32>
    %cst_14 = arith.constant dense<0.000000e+00> : vector<1xf32>
    %26 = vector.multi_reduction <add>, %25, %cst_14 [1, 2] : vector<1x8x1xf32> to vector<1xf32>
    %27 = vector.shape_cast %26 : vector<1xf32> to vector<1x1x1xf32>
    %28 = vector.extract %27[0, 0, 0] : f32 from vector<1x1x1xf32>
    %c0_15 = arith.constant 0 : index
    %29 = memref.load %arg0[%c0_15] : memref<1xf32, #tpu.memory_space<smem>>
    %cst_16 = arith.constant 0.00999999977 : f32
    %30 = arith.mulf %cst_16, %29 : f32
    %31 = arith.addf %28, %30 : f32
    %c0_17 = arith.constant 0 : index
    %c0_18 = arith.constant 0 : index
    %32 = memref.load %arg5[%c0_17, %c0_18] : memref<1x1xf32, #tpu.memory_space<smem>>
    memref.store %31, %arg5[%c0_17, %c0_18] : memref<1x1xf32, #tpu.memory_space<smem>>
    return
  }
}

</mosaic_0001>

<bundles_post_ra>
// kernel: gmuc_loss.1
= control target key start
LH: loop header
LB: loop body
LE: loop exit
PB: predicated region body
PF: predicated region fallthrough
CT: control target
= control target key end

     0   :  { %vm26_vm0 = vcmask 31744   ;;  %s133_s0 = inlined_call_operand.<no memory space> [shape: f32[1], index: 0, kind: input, shape index: {}]   ;;  %s134_s1 = inlined_call_operand.vmem [shape: f32[8,1], index: 1, kind: input, shape index: {}]   ;;  %s135_s2 = inlined_call_operand.vmem [shape: f32[8,1], index: 2, kind: input, shape index: {}]   ;;  %s136_s3 = inlined_call_operand.vmem [shape: f32[8,1], index: 3, kind: input, shape index: {}]   ;;  %s137_s4 = inlined_call_operand.vmem [shape: f32[8,4], index: 4, kind: input, shape index: {}]   ;;  %s138_s5 = inlined_call_operand.hbm [shape: f32[1,1], index: 5, kind: output, shape index: {}]  }
   0x1   :  { %v25_v0 = vld [vmem:[%s137_s4] sm:$0xff] }
   0x2   :  { %11 = vsyncpa [#allocation4], 0  ;;  %v27_v1 = vsel %vm26_vm0, %v25_v0, 0.0  ;;  %v23_v2 = vld [vmem:[%s135_s2] sm:$0xff]  ;;  %vm42_vm2 = vcmask 7168   ;;  %s84_s27 = smov [#allocation3]  }
   0x3   :  { %28 = vadd.xlane.f32.xlu0 %v27_v1  ;;  %v24_v3 = vld [vmem:[%s136_s3] sm:$0xff]  ;;  %s54_s3 = smul.f32 0.01, %s133_s0 }
   0x4   :  { %v22_v5 = vld [vmem:[%s134_s1] sm:$0xff]  ;;  %v37_v7 = vsub.f32 %v23_v2, %v24_v3  ;;  %vm34_vm1 = vcmp.lt.f32.partialorder %v24_v3, 0.5 }
   0x5   :  { %v35_v11 = vsel %vm34_vm1, 0.0, %v24_v3 }
   0x6   :  { %v38_v10 = vmul.f32 %v37_v7, %v37_v7 }
   0x8   :  { %v39_v14 = vmul.f32 0.1, %v38_v10 }
  0x8c   :  { %v29_v4 = vpop.xlane.xlu0 %28 }
  0x8d   :  { %v30_v6 = vmul.f32 0.25, %v29_v4 }
  0x8f   :  { %v31_v8 = vsub.f32 %v22_v5, %v30_v6 }
  0x91   :  { %v32_v9 = vsub.f32 5.0, %v31_v8 }
  0x93   :  { %v33_v12 = vmax.f32 %v32_v9, 0.0 }
  0x95   :  { %v36_v13 = vmul.f32 %v35_v11, %v33_v12 }
  0x97   :  { %v40_v15 = vmul.f32 0.125, %v36_v13 }
  0x99   :  { %v41_v16 = vadd.f32 %v40_v15, %v39_v14 }
  0x9b   :  { %v43_v17 = vsel %vm42_vm2, %v41_v16, 0.0 }
  0x9c   :  { %44 = vadd.xlane.f32.xlu0 %v43_v17 }
 0x125   :  { %v45_v18 = vpop.xlane.xlu0 %44 }
 0x126   :  { %v46_v19 = vrot.slane %v45_v18, 4 }
 0x128   :  { %v47_v20 = vadd.f32 %v46_v19, %v45_v18 }
 0x12a   :  { %v48_v21 = vrot.slane %v47_v20, 2 }
 0x12c   :  { %v49_v22 = vadd.f32 %v48_v21, %v47_v20 }
 0x12e   :  { %v50_v23 = vrot.slane %v49_v22, 1 }
 0x130   :  { %v51_v24 = vadd.f32 %v50_v23, %v49_v22 }
 0x132   :  { %71 = vpush %v51_v24 }
 0x163   :  { %s72_s4 = spop %71 }
 0x164   :  { %s55_s26 = sadd.f32 %s72_s4, %s54_s3 }
 0x166   :  { %57 = sst [smem:[#allocation3]] %s55_s26 }
 0x167   :  { %65 = dma.smem_to_hbm %s84_s27, 16, %s138_s5, [#allocation4]  }
 0x168   :  { %82 = dma.done.wait [#allocation4], 16  }
 0x169   :  { %83 = vsyncadd [#allocation4], 4294967280 }
 0x16a   :  { %69 = sfence }
 0x16b   :  { %70 = vsyncpa [#allocation4], 1 }

</bundles_post_ra>
